<compile_context>
chip_gen: v7x
topology: tpu7x:2x2x1
jax: 0.10.0
libtpu: 0.0.40
codegen_flags: <defaults>
</compile_context>

<pallas_src>
import functools

import jax
import jax.numpy as jnp
from jax.experimental import pallas as pl
from jax.experimental.pallas import tpu as pltpu


def _l_exp_kernel(x_ref, ahp_ref, awt_ref, out_ref, *, mean_val, block_b):
    """One grid step: partial sum of (pool(mean_c(x)) - mean_val)^2 over TB images."""
    c = x_ref.shape[1]
    h = x_ref.shape[2]
    w = x_ref.shape[3]

    ahp = ahp_ref[...]        # (nh, c*h)  row-pooling matrix with 1/(c*p) folded in
    awt = awt_ref[...]        # (w, nw)    column-pooling matrix with 1/p folded in
    mv = jnp.float32(mean_val)

    total = jnp.float32(0.0)
    # block_b is small and static -> unrolled; per-image loads keep vreg pressure low.
    for t in range(block_b):
        # (c, h, w) -> (c*h, w): layout-preserving merge when h % 8 == 0.
        xm = x_ref[t].astype(jnp.float32).reshape(c * h, w)
        # Channel-mean + AvgPool2d fused as  ahp @ xm @ awt  (MXU).
        pooled = jnp.dot(
            jnp.dot(ahp, xm, preferred_element_type=jnp.float32),
            awt,
            preferred_element_type=jnp.float32,
        )                                   # (nh, nw)
        diff = pooled - mv
        total = total + jnp.sum(diff * diff)

    # Single write per grid step; no cross-step accumulator -> no race under "parallel".
    out_ref[...] = total.reshape(1, 1, 1)


def l_exp(x, patch_size, mean_val, *, block_bytes_target=2 * 1024 * 1024):
    """Pallas implementation of L_exp(patch_size, mean_val)(x). Returns a scalar."""
    b, c, h, w = x.shape
    assert h % patch_size == 0 and w % patch_size == 0, "divisible spatial dims"
    nh, nw = h // patch_size, w // patch_size

    # Pick TB = largest divisor of b whose block fits the ~2 MiB streaming target.
    per_image_bytes = c * h * w * x.dtype.itemsize
    tb = 1
    for cand in range(1, b + 1):
        if b % cand == 0 and cand * per_image_bytes <= block_bytes_target:
            tb = cand
    nb = b // tb
    # TODO(synk): for single images larger than the block target (~2 MiB), add a
    # second grid axis tiling h in multiples of patch_size (sliced A_h per tile).

    # Pooling matrices (constant glue, built in plain JAX, fp32).
    ah = (jnp.kron(jnp.eye(nh, dtype=jnp.float32),
                   jnp.ones((1, patch_size), jnp.float32)) / patch_size)     # (nh, h)
    ahp = jnp.tile(ah, (1, c)) / c                                            # (nh, c*h)
    awt = (jnp.kron(jnp.eye(nw, dtype=jnp.float32),
                    jnp.ones((patch_size, 1), jnp.float32)) / patch_size)     # (w, nw)

    kernel = functools.partial(
        _l_exp_kernel, mean_val=float(mean_val), block_b=tb)

    cost = pl.CostEstimate(
        flops=int(2 * b * (nh * c * h * w + nh * w * nw)),
        transcendentals=0,
        bytes_accessed=int(b * c * h * w * x.dtype.itemsize
                           + ahp.size * 4 + awt.size * 4 + nb * 4),
    )

    partials = pl.pallas_call(
        kernel,
        out_shape=jax.ShapeDtypeStruct((nb, 1, 1), jnp.float32),
        grid_spec=pltpu.PrefetchScalarGridSpec(
            num_scalar_prefetch=0,
            grid=(nb,),
            in_specs=[
                pl.BlockSpec((tb, c, h, w), lambda i: (i, 0, 0, 0)),  # native dtype
                pl.BlockSpec((nh, c * h), lambda i: (0, 0)),
                pl.BlockSpec((w, nw), lambda i: (0, 0)),
            ],
            out_specs=pl.BlockSpec((1, 1, 1), lambda i: (i, 0, 0)),
        ),
        compiler_params=pltpu.CompilerParams(
            dimension_semantics=("parallel",),          # batch blocks are independent
            vmem_limit_bytes=32 * 1024 * 1024,
        ),
        cost_estimate=cost,
    )(x, ahp, awt)

    return jnp.sum(partials) * jnp.float32(1.0 / float(b * nh * nw))


def _l_exp_ref(x, patch_size, mean_val):
    """Pure-JAX reference matching the PyTorch forward."""
    b, c, h, w = x.shape
    xm = jnp.mean(x.astype(jnp.float32), axis=1, keepdims=True)          # (b,1,h,w)
    pooled = xm.reshape(b, 1, h // patch_size, patch_size,
                        w // patch_size, patch_size).mean(axis=(3, 5))   # (b,1,nh,nw)
    return jnp.mean((pooled - jnp.float32(mean_val)) ** 2)


if __name__ == "__main__":
    key = jax.random.PRNGKey(0)
    b, c, h, w = 2, 4, 16, 16
    patch_size = 4
    mean_val = 0.6

    x = jax.random.uniform(key, (b, c, h, w), dtype=jnp.float32)

    # f32 input (no host-side recast happens in the wrapper).
    d = jax.block_until_ready(l_exp(x, patch_size, mean_val))
    d_ref = _l_exp_ref(x, patch_size, mean_val)
    assert jnp.allclose(d, d_ref, rtol=1e-3, atol=1e-5), (d, d_ref)

    # bf16 input streams at half the HBM bytes; kernel widens in-VMEM.
    x_bf = x.astype(jnp.bfloat16)
    d_bf = jax.block_until_ready(l_exp(x_bf, patch_size, mean_val))
    d_bf_ref = _l_exp_ref(x_bf, patch_size, mean_val)
    assert jnp.allclose(d_bf, d_bf_ref, rtol=1e-3, atol=1e-5), (d_bf, d_bf_ref)

    print("KERNEL_OK")
</pallas_src>

<mosaic_0001>
module attributes {stable_mosaic.version = 11 : i64} {
  func.func @_l_exp_kernel(%arg0: i32, %arg1: memref<2x4x16x16xf32, #tpu.memory_space<vmem>>, %arg2: memref<4x64xf32, #tpu.memory_space<vmem>>, %arg3: memref<16x4xf32, #tpu.memory_space<vmem>>, %arg4: memref<1x1x1xf32, #tpu.memory_space<vmem>>) attributes {dimension_semantics = [#tpu.dimension_semantics<parallel>], iteration_bounds = array<i64: 1>, scalar_prefetch = 0 : i64, scratch_operands = 0 : i64, tpu.core_type = #tpu.core_type<tc>, window_params = [{transform_indices = @transform_0, window_bounds = array<i64: 2, 4, 16, 16>}, {pipeline_mode = #tpu.pipeline_mode<synchronous>, transform_indices = @transform_1, window_bounds = array<i64: 4, 64>}, {pipeline_mode = #tpu.pipeline_mode<synchronous>, transform_indices = @transform_2, window_bounds = array<i64: 16, 4>}, {transform_indices = @transform_3, window_bounds = array<i64: 1, 1, 1>}]} {
    %c0 = arith.constant 0 : index
    %c0_0 = arith.constant 0 : index
    %0 = vector.load %arg2[%c0, %c0_0] : memref<4x64xf32, #tpu.memory_space<vmem>>, vector<4x64xf32>
    %c0_1 = arith.constant 0 : index
    %c0_2 = arith.constant 0 : index
    %1 = vector.load %arg3[%c0_1, %c0_2] : memref<16x4xf32, #tpu.memory_space<vmem>>, vector<16x4xf32>
    %c0_3 = arith.constant 0 : index
    %c0_4 = arith.constant 0 : index
    %c0_5 = arith.constant 0 : index
    %c0_6 = arith.constant 0 : index
    %2 = vector.load %arg1[%c0_3, %c0_4, %c0_5, %c0_6] : memref<2x4x16x16xf32, #tpu.memory_space<vmem>>, vector<1x4x16x16xf32>
    %3 = vector.shape_cast %2 : vector<1x4x16x16xf32> to vector<4x16x16xf32>
    %4 = vector.shape_cast %3 : vector<4x16x16xf32> to vector<64x16xf32>
    %cst = arith.constant dense<0.000000e+00> : vector<4x16xf32>
    %5 = tpu.matmul %0, %4, %cst {dimension_numbers = #tpu.dot_dimension_numbers<[1], [0], [0], [1], [0, 0, 1, 1], [], []>} : vector<4x64xf32>, vector<64x16xf32>, vector<4x16xf32> -> vector<4x16xf32>
    %cst_7 = arith.constant dense<0.000000e+00> : vector<4x4xf32>
    %6 = tpu.matmul %5, %1, %cst_7 {dimension_numbers = #tpu.dot_dimension_numbers<[1], [0], [0], [1], [0, 0, 1, 1], [], []>} : vector<4x16xf32>, vector<16x4xf32>, vector<4x4xf32> -> vector<4x4xf32>
    %cst_8 = arith.constant 6.000000e-01 : f32
    %7 = vector.broadcast %cst_8 : f32 to vector<4x4xf32>
    %8 = arith.subf %6, %7 : vector<4x4xf32>
    %9 = arith.mulf %8, %8 : vector<4x4xf32>
    %10 = vector.shape_cast %9 : vector<4x4xf32> to vector<1x4x4xf32>
    %cst_9 = arith.constant dense<0.000000e+00> : vector<1xf32>
    %11 = vector.multi_reduction <add>, %10, %cst_9 [1, 2] : vector<1x4x4xf32> to vector<1xf32>
    %12 = vector.shape_cast %11 : vector<1xf32> to vector<1x1x1xf32>
    %13 = vector.extract %12[0, 0, 0] : f32 from vector<1x1x1xf32>
    %cst_10 = arith.constant 0.000000e+00 : f32
    %14 = arith.addf %cst_10, %13 : f32
    %c1 = arith.constant 1 : index
    %c0_11 = arith.constant 0 : index
    %c0_12 = arith.constant 0 : index
    %c0_13 = arith.constant 0 : index
    %15 = vector.load %arg1[%c1, %c0_11, %c0_12, %c0_13] : memref<2x4x16x16xf32, #tpu.memory_space<vmem>>, vector<1x4x16x16xf32>
    %16 = vector.shape_cast %15 : vector<1x4x16x16xf32> to vector<4x16x16xf32>
    %17 = vector.shape_cast %16 : vector<4x16x16xf32> to vector<64x16xf32>
    %cst_14 = arith.constant dense<0.000000e+00> : vector<4x16xf32>
    %18 = tpu.matmul %0, %17, %cst_14 {dimension_numbers = #tpu.dot_dimension_numbers<[1], [0], [0], [1], [0, 0, 1, 1], [], []>} : vector<4x64xf32>, vector<64x16xf32>, vector<4x16xf32> -> vector<4x16xf32>
    %cst_15 = arith.constant dense<0.000000e+00> : vector<4x4xf32>
    %19 = tpu.matmul %18, %1, %cst_15 {dimension_numbers = #tpu.dot_dimension_numbers<[1], [0], [0], [1], [0, 0, 1, 1], [], []>} : vector<4x16xf32>, vector<16x4xf32>, vector<4x4xf32> -> vector<4x4xf32>
    %cst_16 = arith.constant 6.000000e-01 : f32
    %20 = vector.broadcast %cst_16 : f32 to vector<4x4xf32>
    %21 = arith.subf %19, %20 : vector<4x4xf32>
    %22 = arith.mulf %21, %21 : vector<4x4xf32>
    %23 = vector.shape_cast %22 : vector<4x4xf32> to vector<1x4x4xf32>
    %cst_17 = arith.constant dense<0.000000e+00> : vector<1xf32>
    %24 = vector.multi_reduction <add>, %23, %cst_17 [1, 2] : vector<1x4x4xf32> to vector<1xf32>
    %25 = vector.shape_cast %24 : vector<1xf32> to vector<1x1x1xf32>
    %26 = vector.extract %25[0, 0, 0] : f32 from vector<1x1x1xf32>
    %27 = arith.addf %14, %26 : f32
    %28 = vector.broadcast %27 : f32 to vector<1x1x1xf32>
    %c0_18 = arith.constant 0 : index
    %c0_19 = arith.constant 0 : index
    %c0_20 = arith.constant 0 : index
    %29 = vector.load %arg4[%c0_18, %c0_19, %c0_20] : memref<1x1x1xf32, #tpu.memory_space<vmem>>, vector<1x1x1xf32>
    tpu.vector_store %arg4[%c0_18, %c0_19, %c0_20], %28 {strides = array<i32>} : memref<1x1x1xf32, #tpu.memory_space<vmem>>, vector<1x1x1xf32>,
    return
  }
  func.func @transform_0(%arg0: i32) -> (i32, i32, i32, i32) {
    %c0_i32 = arith.constant 0 : i32
    %c0_i32_0 = arith.constant 0 : i32
    %c0_i32_1 = arith.constant 0 : i32
    %c0_i32_2 = arith.constant 0 : i32
    return %arg0, %c0_i32, %c0_i32_0, %c0_i32_1 : i32, i32, i32, i32
  }
  func.func @transform_1(%arg0: i32) -> (i32, i32) {
    %c0_i32 = arith.constant 0 : i32
    %c0_i32_0 = arith.constant 0 : i32
    %c0_i32_1 = arith.constant 0 : i32
    return %c0_i32, %c0_i32_0 : i32, i32
  }
  func.func @transform_2(%arg0: i32) -> (i32, i32) {
    %c0_i32 = arith.constant 0 : i32
    %c0_i32_0 = arith.constant 0 : i32
    %c0_i32_1 = arith.constant 0 : i32
    return %c0_i32, %c0_i32_0 : i32, i32
  }
  func.func @transform_3(%arg0: i32) -> (i32, i32, i32) {
    %c0_i32 = arith.constant 0 : i32
    %c0_i32_0 = arith.constant 0 : i32
    %c0_i32_1 = arith.constant 0 : i32
    return %arg0, %c0_i32, %c0_i32_0 : i32, i32, i32
  }
}

</mosaic_0001>

<bundles_post_ra>
// kernel: tpu_custom_call.1
= control target key start
LH: loop header
LB: loop body
LE: loop exit
PB: predicated region body
PF: predicated region fallthrough
CT: control target
= control target key end

     0   :  { %8 = vsyncpa [#allocation3], 0  ;;  %s626_s0 = inlined_call_operand.hbm [shape: f32[2,4,16,16], index: 0, kind: input, shape index: {}]   ;;  %s627_s1 = inlined_call_operand.vmem [shape: f32[4,64], index: 1, kind: input, shape index: {}]   ;;  %s628_s2 = inlined_call_operand.vmem [shape: f32[16,4], index: 2, kind: input, shape index: {}]   ;;  %s629_s3 = inlined_call_operand.hbm [shape: f32[1,1,1], index: 3, kind: output, shape index: {}]  }
   0x1   :  { %9 = vsyncpa [#allocation4], 0  ;;  %s556_s12 = smov [#allocation2]   ;;  %s508_s16 = scalar_lea.hbm %s626_s0, 2048 }
   0x2   :  { %s15_s13 = sshll.u32 %s556_s12, 4  ;;  %p509_p0 = scmp.ne.s32.totalorder %s626_s0, %s508_s16  ;;  %s16_s13 = int_to_ptr.vmem [resolvable:$true] %s15_s13 }
   0x3   :  { %p512_p1 = scmp.lt.u32.totalorder %s508_s16, %s626_s0 }
   0x5   :  { %p514_p2 = pnand %p512_p1, %p509_p0 }
   0x7   :  { %517 = shalt.err (!%p514_p2)
}
   0x8   :  { %s518_s21 = scalar_lea.vmem %s16_s13, 2048  ;;  %p523_p4 = scmp.lt.s32.totalorder %s16_s13, %s16_s13 }
   0x9   :  { %p519_p3 = scmp.ne.s32.totalorder %s16_s13, %s518_s21  ;;  %p524_p5 = scmp.lt.s32.totalorder %s518_s21, %s518_s21 }
   0xb   :  { %p525_p6 = por %p524_p5, %p523_p4 }
   0xd   :  { %p526_p7 = pnand %p525_p6, %p519_p3 }
   0xf   :  { %529 = shalt.err (!%p526_p7)
}
  0x10   :  { %s557_s22 = smov 128   ;;  %s558_s23 = smov 8  }
  0x11   :  { %21 = dma.hbm_to_vmem [thread:$0]  %s626_s0, 2048, %s16_s13, [#allocation3], %s557_s22, %s557_s22, %s558_s23  }
  0x12   :  { %552 = dma.done.wait [#allocation3], 2048  }
  0x13   :  { %553 = vsyncadd [#allocation3], 4294965248  ;;  %v559_v0 = vmov 0.0|0.0   ;;  %vm560_vm0 = vmmov 0   ;;  %v561_v1 = vmov 0.0   ;;  %v32_v2 = vld [vmem:[#allocation2] sm:$0xff] }
  0x14   :  { %467 = vmatprep.subr.bf16.mxu0 %v559_v0  ;;  %431 = vmatprep.mubr.msk.f32.mxu0 %vm560_vm0, %v561_v1  ;;  %v33_v3 = vld [vmem:[#allocation2 + $0x8] sm:$0xff]  ;;  %v34_v4 = vld [vmem:[#allocation2 + $0x10] sm:$0xff]  ;;  %v35_v6 = vld [vmem:[#allocation2 + $0x18] sm:$0xff]  ;;  %vm40_vm1 = vcmask 523264   ;;  %vm114_vm2 = vcmask 130048   ;;  %vm190_vm3 = vcmask 27648  }
  0x15   :  { %479 = vmatprep.subr.bf16.mxu1 %v559_v0  ;;  %438 = vmatprep.mubr.msk.f32.mxu1 %vm560_vm0, %v561_v1  ;;  %v468_v5 = vpack.c.bf16 %v33_v3, %v32_v2  ;;  %v471_v7 = vpack.c.bf16 %v35_v6, %v34_v4  ;;  %v30_v8 = vld [vmem:[%s628_s2] sm:$0xff]  ;;  %v31_v9 = vld [vmem:[%s628_s2 + $0x8] sm:$0xff]  ;;  %v38_v14 = vld [vmem:[#allocation2 + $0x30] sm:$0xff]  ;;  %s562_s2 = smov [#allocation5]   ;;  %vm368_vm4 = vcmask 0  }
  0x16   :  { %v36_v10 = vld [vmem:[#allocation2 + $0x20] sm:$0xff]  ;;  %v37_v11 = vld [vmem:[#allocation2 + $0x28] sm:$0xff]  ;;  %v480_v12 = vpack.c.bf16 %v31_v9, %v30_v8  ;;  %v39_v15 = vld [vmem:[#allocation2 + $0x38] sm:$0xff]  ;;  %s376_s4 = sshll.u32 %s562_s2, 4  ;;  %s377_s4 = int_to_ptr.vmem [resolvable:$true] %s376_s4 }
  0x17   :  { %469 = vmatpush3.bf16.msra.mxu0 %v468_v5  ;;  %v474_v13 = vpack.c.bf16 %v37_v11, %v36_v10  ;;  %v477_v16 = vpack.c.bf16 %v39_v15, %v38_v14  ;;  %v29_v17 = vld [vmem:[%s627_s1] sm:$0xf]  ;;  %v204_v19 = vld [vmem:[#allocation2 + $0x48] sm:$0xff]  ;;  %v205_v21 = vld [vmem:[#allocation2 + $0x50] sm:$0xff]  ;;  %s530_s7 = scalar_lea.vmem %s377_s4, 16  ;;  %s534_s8 = scalar_lea.vmem %s377_s4, 32 }
  0x18   :  { %470 = vmatprep.subr.bf16.mxu0 %v559_v0  ;;  %481 = vmatpush3.bf16.msra.mxu1 %v480_v12  ;;  %v203_v18 = vld [vmem:[#allocation2 + $0x40] sm:$0xff]  ;;  %v206_v22 = vld [vmem:[#allocation2 + $0x58] sm:$0xff]  ;;  %v208_v27 = vld [vmem:[#allocation2 + $0x68] sm:$0xff]  ;;  %p531_p8 = scmp.ne.s32.totalorder %s377_s4, %s530_s7  ;;  %p535_p9 = scmp.lt.s32.totalorder %s377_s4, %s377_s4 }
  0x19   :  { %482 = vmatprep.subr.bf16.mxu1 %v559_v0  ;;  %v483_v20 = vpack.c.bf16 %v204_v19, %v203_v18  ;;  %v486_v25 = vpack.c.bf16 %v206_v22, %v205_v21  ;;  %v207_v26 = vld [vmem:[#allocation2 + $0x60] sm:$0xff]  ;;  %v209_v29 = vld [vmem:[#allocation2 + $0x70] sm:$0xff]  ;;  %v210_v30 = vld [vmem:[#allocation2 + $0x78] sm:$0xff]  ;;  %p536_p10 = scmp.lt.s32.totalorder %s534_s8, %s530_s7 }
  0x1a   :  { %v489_v28 = vpack.c.bf16 %v208_v27, %v207_v26  ;;  %v492_v31 = vpack.c.bf16 %v210_v30, %v209_v29 }
  0x1b   :  { %472 = vmatpush3.bf16.msra.mxu0 %v471_v7  ;;  %p537_p11 = por %p536_p10, %p535_p9 }
  0x1c   :  { %473 = vmatprep.subr.bf16.mxu0 %v559_v0 }
  0x1d   :  { %p538_p12 = pnand %p537_p11, %p531_p8 }
  0x1f   :  { %475 = vmatpush3.bf16.msra.mxu0 %v474_v13 }
  0x20   :  { %476 = vmatprep.subr.bf16.mxu0 %v559_v0 }
  0x23   :  { %478 = vmatpush3.bf16.msra.mxu0 %v477_v16 }
  0x24   :  { %494 = vmatprep.subr.bf16.mxu0 %v559_v0 }
  0x26   :  { %432 = vmatmul.mubr.msk.f32.vlgmr.msra.gmra.mrb[0].mxu0 %vm40_vm1, %v29_v17 }
  0x27   :  { %496 = vmatpush3.bf16.msra.mxu0 %v480_v12  ;;  %464 = vmatprep.mubr.msk.f32.mxu0 %vm560_vm0, %v561_v1 }
  0xf9   :  { %v110_v23 = vpop.f32.mrb[0].mxu0 }
  0xfa   :  { %v433_v24 = vpop.f32.mrb[1].mxu0  ;;  %439 = vmatmul.mubr.msk.f32.vlgmr.msra.gmra.mrb[0].mxu1 %vm114_vm2, %v110_v23 }
  0xfb   :  { %484 = vmatpush3.bf16.msra.mxu1 %v483_v20  ;;  %457 = vmatprep.mubr.msk.f32.mxu1 %vm560_vm0, %v561_v1 }
  0xfc   :  { %485 = vmatprep.subr.bf16.mxu1 %v559_v0 }
  0xff   :  { %487 = vmatpush3.bf16.msra.mxu1 %v486_v25 }
 0x100   :  { %488 = vmatprep.subr.bf16.mxu1 %v559_v0 }
 0x103   :  { %490 = vmatpush3.bf16.msra.mxu1 %v489_v28 }
 0x104   :  { %491 = vmatprep.subr.bf16.mxu1 %v559_v0 }
 0x107   :  { %493 = vmatpush3.bf16.msra.mxu1 %v492_v31 }
 0x10a   :  { %458 = vmatmul.mubr.msk.f32.vlgmr.msra.gmra.mrb[2].mxu1 %vm40_vm1, %v29_v17 }
 0x1cd   :  { %v184_v32 = vpop.f32.mrb[0].mxu1 }
 0x1ce   :  { %v387_v33 = vadd.f32 -0.6, %v184_v32  ;;  %v440_v34 = vpop.f32.mrb[1].mxu1 }
 0x1d0   :  { %v189_v35 = vmul.f32 %v387_v33, %v387_v33 }
 0x1d2   :  { %v191_v36 = vsel %vm190_vm3, %v189_v35, 0.0 }
 0x1d3   :  { %192 = vadd.xlane.f32.xlu0 %v191_v36 }
 0x1dd   :  { %v277_v37 = vpop.f32.mrb[2].mxu1 }
 0x1de   :  { %v459_v38 = vpop.f32.mrb[3].mxu1  ;;  %465 = vmatmul.mubr.msk.f32.vlgmr.msra.gmra.mrb[2].mxu0 %vm114_vm2, %v277_v37 }
 0x260   :  { %v193_v39 = vpop.xlane.xlu0 %192 }
 0x261   :  { %v194_v40 = vrot.slane %v193_v39, 4 }
 0x263   :  { %v195_v41 = vadd.f32 %v194_v40, %v193_v39 }
 0x265   :  { %v196_v42 = vrot.slane %v195_v41, 2 }
 0x267   :  { %v197_v43 = vadd.f32 %v196_v42, %v195_v41 }
 0x269   :  { %v198_v44 = vrot.slane %v197_v43, 1 }
 0x26b   :  { %v199_v45 = vadd.f32 %v198_v44, %v197_v43 }
 0x26d   :  { %497 = vpush %v199_v45 }
 0x29e   :  { %s498_s1 = spop %497 }
 0x2b1   :  { %v350_v46 = vpop.f32.mrb[2].mxu0 }
 0x2b2   :  { %v390_v47 = vadd.f32 -0.6, %v350_v46  ;;  %v466_v48 = vpop.f32.mrb[3].mxu0 }
 0x2b4   :  { %v355_v49 = vmul.f32 %v390_v47, %v390_v47 }
 0x2b6   :  { %v356_v50 = vsel %vm190_vm3, %v355_v49, 0.0 }
 0x2b7   :  { %357 = vadd.xlane.f32.xlu0 %v356_v50 }
 0x344   :  { %v358_v51 = vpop.xlane.xlu0 %357 }
 0x345   :  { %v359_v52 = vrot.slane %v358_v51, 4 }
 0x347   :  { %v360_v53 = vadd.f32 %v359_v52, %v358_v51 }
 0x349   :  { %v361_v54 = vrot.slane %v360_v53, 2 }
 0x34b   :  { %v362_v55 = vadd.f32 %v361_v54, %v360_v53 }
 0x34d   :  { %v363_v56 = vrot.slane %v362_v55, 1 }
 0x34f   :  { %v364_v57 = vadd.f32 %v363_v56, %v362_v55 }
 0x351   :  { %499 = vpush %v364_v57 }
 0x382   :  { %s500_s5 = spop %499 }
 0x383   :  { %s366_s6 = sadd.f32 %s500_s5, %s498_s1 }
 0x385   :  { %v367_v58 = vstv %s366_s6 }
 0x386   :  { %369 = vst.msk [vmem:[#allocation5] sm:$0x1] %vm368_vm4, %v367_v58 }
 0x387   :  { %541 = shalt.err (!%p538_p12)
}
 0x388   :  { %s542_s11 = scalar_lea.hbm %s629_s3, 16 }
 0x389   :  { %p543_p13 = scmp.ne.s32.totalorder %s629_s3, %s542_s11  ;;  %p546_p0 = scmp.lt.u32.totalorder %s542_s11, %s629_s3 }
 0x38b   :  { %p548_p1 = pnand %p546_p0, %p543_p13 }
 0x38d   :  { %551 = shalt.err (!%p548_p1)
}
 0x38e   :  { %379 = dma.vmem_to_hbm [thread:$0]  %s377_s4, 16, %s629_s3, [#allocation4]  }
 0x38f   :  { %554 = dma.done.wait [#allocation4], 16  }
 0x390   :  { %555 = vsyncadd [#allocation4], 4294967280 }
 0x391   :  { %383 = vsyncpa [#allocation3], 1 }
 0x392   :  { %384 = vsyncpa [#allocation4], 1 }

</bundles_post_ra>
